<compile_context>
chip_gen: v6e
topology: v6e:2x2x1
jax: 0.10.0
libtpu: 0.0.40
codegen_flags: <defaults>
</compile_context>

<pallas_src>
import jax
import jax.numpy as jnp
from jax.experimental import pallas as pl
from jax.experimental.pallas import tpu as pltpu


# --------------------------------------------------------------------------
# Kernel
# --------------------------------------------------------------------------
def head_basic_kernel(x_ref, wt_ref, b_ref, o_ref, acc_ref):
    # x_ref  : (tn, C, thw)      VMEM tile of the feature map
    # wt_ref : (C, class_num)    f32, pre-transposed, pre-scaled by 1/(H*W)
    # b_ref  : (1, class_num)    f32
    # o_ref  : (tn, class_num)   output tile (resident across the k axis)
    # acc_ref: (tn, C)           f32 partial spatial-sum accumulator
    k = pl.program_id(1)

    @pl.when(k == 0)
    def _():
        acc_ref[...] = jnp.zeros_like(acc_ref)

    # Partial sum over this H*W tile (the 1/(H*W) scale lives in wt_ref).
    acc_ref[...] += jnp.sum(x_ref[...].astype(jnp.float32), axis=-1)

    @pl.when(k == pl.num_programs(1) - 1)
    def _():
        logits = jnp.dot(acc_ref[...], wt_ref[...],
                         preferred_element_type=jnp.float32)
        o_ref[...] = (logits + b_ref[...]).astype(o_ref.dtype)


# --------------------------------------------------------------------------
# Host-side tiling helpers (pure Python ints, trace-time only)
# --------------------------------------------------------------------------
def _divisors(n):
    ds = []
    i = 1
    while i * i <= n:
        if n % i == 0:
            ds.append(i)
            if i != n // i:
                ds.append(n // i)
        i += 1
    return sorted(ds)


def _divisors_multiple_of(n, base):
    out = []
    d = base
    while d <= n:
        if n % d == 0:
            out.append(d)
        d += base
    return out


def _round_up(x, m):
    return (x + m - 1) // m * m


def _vmem_budget():
    """(x-tile budget, vmem_limit cap) derived from this generation's VMEM."""
    try:
        info = pltpu.get_tpu_info()
        cap = int(getattr(info, "vmem_capacity_bytes", 64 << 20))
        if cap <= 0:
            cap = 64 << 20
    except Exception:
        cap = 64 << 20          # conservative: v7x per-TensorCore VMEM
    max_tile_bytes = max(4 << 20, cap // 4)     # 32 MiB v5e/v6e, 16 MiB v7x
    vmem_limit_cap = max(32 << 20, int(cap * 0.70))
    return max_tile_bytes, vmem_limit_cap


# --------------------------------------------------------------------------
# Forward wrapper
# --------------------------------------------------------------------------
def head_basic_forward(feat_list, target_feat, weight, bias,
                       *, max_tile_bytes=None):
    """feat_list: list of NCHW arrays; weight: (class_num, C); bias: (class_num,)."""
    x_nchw = feat_list[target_feat]
    N, C, H, W = x_nchw.shape
    class_num = weight.shape[0]
    HW = H * W
    dtype_bytes = jnp.dtype(x_nchw.dtype).itemsize

    budget, vmem_limit_cap = _vmem_budget()
    if max_tile_bytes is None:
        max_tile_bytes = budget

    x = x_nchw.reshape(N, C, HW)            # glue reshape only (no HBM copy)

    # ---- legal batch tiles: divisors of N that are mult-of-8 or == N -------
    legal_tn = sorted(d for d in _divisors(N) if d % 8 == 0 or d == N)
    tn_min = legal_tn[0]

    # ---- H*W (lane) tile: full extent, or a 128-multiple divisor of HW -----
    thw_cands = _divisors_multiple_of(HW, 128)
    if HW not in thw_cands:
        thw_cands.append(HW)                # full extent is always legal
    per_row_budget = max(1, max_tile_bytes // tn_min)
    fitting_thw = [t for t in thw_cands if C * t * dtype_bytes <= per_row_budget]
    # Fallback (no fitting candidate): smallest legal tile; vmem limit adapts.
    thw = max(fitting_thw) if fitting_thw else min(thw_cands)
    # TODO(synk): for pathological (huge C*HW, indivisible HW) shapes a ragged
    # second-stage call would be needed; not required for typical CNN heads.

    # ---- batch tile: largest legal within budget; prefer >=2 blocks so both
    #      v7x TensorCores stream HBM (harmless single extra step elsewhere) --
    row_bytes = C * thw * dtype_bytes
    tn_budget = max(1, max_tile_bytes // row_bytes)
    fitting_tn = [d for d in legal_tn if d <= tn_budget]
    if fitting_tn:
        multi = [d for d in fitting_tn if N // d >= 2]
        tn = max(multi) if multi else max(fitting_tn)
    else:
        tn = tn_min                          # may slightly exceed budget

    grid = (N // tn, HW // thw)              # exact tiling, no padding

    # Fold 1/(H*W) into the transposed weight; keep matmul operands in f32.
    w_t = (weight.T / float(HW)).astype(jnp.float32)       # (C, class_num)
    b = bias.reshape(1, class_num).astype(jnp.float32)

    # ---- VMEM sizing from the *final* tiles (double-buffered x & out, plus
    #      resident weight/bias and the f32 accumulator), with headroom -------
    out_bytes = jnp.dtype(x_nchw.dtype).itemsize
    x_tile_bytes = tn * _round_up(C, 8) * _round_up(thw, 128) * dtype_bytes
    out_tile_bytes = _round_up(tn, 8) * _round_up(class_num, 128) * out_bytes
    w_res_bytes = _round_up(C, 8) * _round_up(class_num, 128) * 4
    b_res_bytes = 8 * _round_up(class_num, 128) * 4
    acc_bytes = _round_up(tn, 8) * _round_up(C, 128) * 4
    vmem_bytes = (2 * x_tile_bytes + 2 * out_tile_bytes
                  + 2 * (w_res_bytes + b_res_bytes) + acc_bytes + (4 << 20))
    vmem_bytes = int(min(max(vmem_bytes, 32 << 20), vmem_limit_cap))

    cost = pl.CostEstimate(
        flops=N * C * HW + 2 * N * C * class_num,
        transcendentals=0,
        bytes_accessed=N * C * HW * dtype_bytes
                       + C * class_num * 4
                       + N * class_num * out_bytes,
    )

    out = pl.pallas_call(
        head_basic_kernel,
        out_shape=jax.ShapeDtypeStruct((N, class_num), x_nchw.dtype),
        grid_spec=pltpu.PrefetchScalarGridSpec(
            num_scalar_prefetch=0,
            grid=grid,
            in_specs=[
                pl.BlockSpec((tn, C, thw), lambda i, k: (i, 0, k)),
                pl.BlockSpec((C, class_num), lambda i, k: (0, 0)),   # resident
                pl.BlockSpec((1, class_num), lambda i, k: (0, 0)),   # resident
            ],
            out_specs=pl.BlockSpec((tn, class_num), lambda i, k: (i, 0)),
            scratch_shapes=[pltpu.VMEM((tn, C), jnp.float32)],
        ),
        compiler_params=pltpu.CompilerParams(
            dimension_semantics=("parallel", "arbitrary"),
            vmem_limit_bytes=vmem_bytes,
        ),
        cost_estimate=cost,
    )(x, w_t, b)

    return out


# --------------------------------------------------------------------------
# Self-test
# --------------------------------------------------------------------------
if __name__ == "__main__":
    key = jax.random.PRNGKey(0)

    # Module config (small, consistent with the forward):
    target_feat = 1
    Cins = [4, 8]            # channels of each feature map in feat_list
    class_num = 10
    N, H, W = 2, 16, 16

    k_feat0, k_feat1, k_w, k_b = jax.random.split(key, 4)

    feat_list = [
        jax.random.normal(k_feat0, (N, Cins[0], H, W), dtype=jnp.float32),
        jax.random.normal(k_feat1, (N, Cins[1], H, W), dtype=jnp.float32),
    ]

    # Deterministic Linear init (PyTorch-style uniform(-1/sqrt(fan_in), 1/sqrt(fan_in)))
    fan_in = Cins[target_feat]
    bound = 1.0 / (fan_in ** 0.5)
    weight = jax.random.uniform(k_w, (class_num, fan_in), jnp.float32, -bound, bound)
    bias = jax.random.uniform(k_b, (class_num,), jnp.float32, -bound, bound)

    out = head_basic_forward(feat_list, target_feat, weight, bias)
    out = jax.block_until_ready(out)

    # Reference check in plain JAX (same semantics as the PyTorch module)
    x = feat_list[target_feat]
    ref = jnp.mean(x, axis=(2, 3)) @ weight.T + bias
    assert out.shape == (N, class_num)
    assert jnp.allclose(out, ref, atol=1e-5, rtol=1e-5)

    print("KERNEL_OK")
</pallas_src>

<mosaic_0001>
module attributes {stable_mosaic.version = 11 : i64} {
  func.func @head_basic_kernel(%arg0: i32, %arg1: i32, %arg2: memref<2x8x256xf32, #tpu.memory_space<vmem>>, %arg3: memref<8x10xf32, #tpu.memory_space<vmem>>, %arg4: memref<1x10xf32, #tpu.memory_space<vmem>>, %arg5: memref<2x10xf32, #tpu.memory_space<vmem>>, %arg6: memref<2x8xf32, #tpu.memory_space<vmem>>) attributes {dimension_semantics = [#tpu.dimension_semantics<parallel>, #tpu.dimension_semantics<arbitrary>], iteration_bounds = array<i64: 1, 1>, scalar_prefetch = 0 : i64, scratch_operands = 1 : i64, tpu.core_type = #tpu.core_type<tc>, window_params = [{transform_indices = @transform_0, window_bounds = array<i64: 2, 8, 256>}, {pipeline_mode = #tpu.pipeline_mode<synchronous>, transform_indices = @transform_1, window_bounds = array<i64: 8, 10>}, {pipeline_mode = #tpu.pipeline_mode<synchronous>, transform_indices = @transform_2, window_bounds = array<i64: 1, 10>}, {transform_indices = @transform_3, window_bounds = array<i64: 2, 10>}]} {
    %c0_i32 = arith.constant 0 : i32
    %0 = arith.cmpi eq, %arg1, %c0_i32 : i32
    %1 = arith.extui %0 : i1 to i32
    %c0_i32_0 = arith.constant 0 : i32
    %2 = arith.cmpi ne, %1, %c0_i32_0 : i32
    scf.if %2 {
      %cst_9 = arith.constant 0.000000e+00 : f32
      %11 = vector.broadcast %cst_9 : f32 to vector<2x8xf32>
      %c0_10 = arith.constant 0 : index
      %c0_11 = arith.constant 0 : index
      %12 = vector.load %arg6[%c0_10, %c0_11] : memref<2x8xf32, #tpu.memory_space<vmem>>, vector<2x8xf32>
      tpu.vector_store %arg6[%c0_10, %c0_11], %11 {strides = array<i32>} : memref<2x8xf32, #tpu.memory_space<vmem>>, vector<2x8xf32>,
    } else {
    }
    %c0 = arith.constant 0 : index
    %c0_1 = arith.constant 0 : index
    %3 = vector.load %arg6[%c0, %c0_1] : memref<2x8xf32, #tpu.memory_space<vmem>>, vector<2x8xf32>
    %c0_2 = arith.constant 0 : index
    %c0_3 = arith.constant 0 : index
    %c0_4 = arith.constant 0 : index
    %4 = vector.load %arg2[%c0_2, %c0_3, %c0_4] : memref<2x8x256xf32, #tpu.memory_space<vmem>>, vector<2x8x256xf32>
    %cst = arith.constant dense<0.000000e+00> : vector<2x8xf32>
    %5 = vector.multi_reduction <add>, %4, %cst [2] : vector<2x8x256xf32> to vector<2x8xf32>
    %6 = arith.addf %3, %5 : vector<2x8xf32>
    %c0_5 = arith.constant 0 : index
    %c0_6 = arith.constant 0 : index
    %7 = vector.load %arg6[%c0_5, %c0_6] : memref<2x8xf32, #tpu.memory_space<vmem>>, vector<2x8xf32>
    tpu.vector_store %arg6[%c0_5, %c0_6], %6 {strides = array<i32>} : memref<2x8xf32, #tpu.memory_space<vmem>>, vector<2x8xf32>,
    %c0_i32_7 = arith.constant 0 : i32
    %8 = arith.cmpi eq, %arg1, %c0_i32_7 : i32
    %9 = arith.extui %8 : i1 to i32
    %c0_i32_8 = arith.constant 0 : i32
    %10 = arith.cmpi ne, %9, %c0_i32_8 : i32
    scf.if %10 {
      %c0_9 = arith.constant 0 : index
      %c0_10 = arith.constant 0 : index
      %11 = vector.load %arg6[%c0_9, %c0_10] : memref<2x8xf32, #tpu.memory_space<vmem>>, vector<2x8xf32>
      %c0_11 = arith.constant 0 : index
      %c0_12 = arith.constant 0 : index
      %12 = vector.load %arg3[%c0_11, %c0_12] : memref<8x10xf32, #tpu.memory_space<vmem>>, vector<8x10xf32>
      %cst_13 = arith.constant dense<0.000000e+00> : vector<2x10xf32>
      %13 = tpu.matmul %11, %12, %cst_13 {dimension_numbers = #tpu.dot_dimension_numbers<[1], [0], [0], [1], [0, 0, 1, 1], [], []>} : vector<2x8xf32>, vector<8x10xf32>, vector<2x10xf32> -> vector<2x10xf32>
      %c0_14 = arith.constant 0 : index
      %c0_15 = arith.constant 0 : index
      %14 = vector.load %arg4[%c0_14, %c0_15] : memref<1x10xf32, #tpu.memory_space<vmem>>, vector<1x10xf32>
      %15 = vector.broadcast %14 : vector<1x10xf32> to vector<2x10xf32>
      %16 = arith.addf %13, %15 : vector<2x10xf32>
      %c0_16 = arith.constant 0 : index
      %c0_17 = arith.constant 0 : index
      %17 = vector.load %arg5[%c0_16, %c0_17] : memref<2x10xf32, #tpu.memory_space<vmem>>, vector<2x10xf32>
      tpu.vector_store %arg5[%c0_16, %c0_17], %16 {strides = array<i32>} : memref<2x10xf32, #tpu.memory_space<vmem>>, vector<2x10xf32>,
    } else {
    }
    return
  }
  func.func @transform_0(%arg0: i32, %arg1: i32) -> (i32, i32, i32) {
    %c0_i32 = arith.constant 0 : i32
    %c0_i32_0 = arith.constant 0 : i32
    return %arg0, %c0_i32, %arg1 : i32, i32, i32
  }
  func.func @transform_1(%arg0: i32, %arg1: i32) -> (i32, i32) {
    %c0_i32 = arith.constant 0 : i32
    %c0_i32_0 = arith.constant 0 : i32
    %c0_i32_1 = arith.constant 0 : i32
    return %c0_i32, %c0_i32_0 : i32, i32
  }
  func.func @transform_2(%arg0: i32, %arg1: i32) -> (i32, i32) {
    %c0_i32 = arith.constant 0 : i32
    %c0_i32_0 = arith.constant 0 : i32
    %c0_i32_1 = arith.constant 0 : i32
    return %c0_i32, %c0_i32_0 : i32, i32
  }
  func.func @transform_3(%arg0: i32, %arg1: i32) -> (i32, i32) {
    %c0_i32 = arith.constant 0 : i32
    %c0_i32_0 = arith.constant 0 : i32
    return %arg0, %c0_i32 : i32, i32
  }
}

</mosaic_0001>

<bundles_post_ra>
// kernel: tpu_custom_call.1
= control target key start
LH: loop header
LB: loop body
LE: loop exit
PB: predicated region body
PF: predicated region fallthrough
CT: control target
= control target key end

     0   :  { %8 = vsyncpa [#allocation4], 0  ;;  %s303_s0 = inlined_call_operand.hbm [shape: f32[2,8,256], index: 0, kind: input, shape index: {}]   ;;  %s304_s1 = inlined_call_operand.hbm [shape: f32[8,10], index: 1, kind: input, shape index: {}]   ;;  %s305_s2 = inlined_call_operand.vmem [shape: f32[1,10], index: 2, kind: input, shape index: {}]   ;;  %s306_s3 = inlined_call_operand.hbm [shape: f32[2,10], index: 3, kind: output, shape index: {}]  }
   0x1   :  { %9 = vsyncpa [#allocation7], 0 }
   0x2   :  { %10 = vsyncpa [#allocation5], 0  ;;  %s262_s12 = smov [#allocation3]  }
   0x3   :  { %s16_s13 = sshll.u32 %s262_s12, 4  ;;  %s17_s13 = int_to_ptr.vmem [resolvable:$true] %s16_s13 }
   0x4   :  { %s204_s14 = scalar_lea.vmem %s17_s13, 512  ;;  %p209_p1 = scmp.lt.s32.totalorder %s17_s13, %s17_s13 }
   0x5   :  { %p205_p0 = scmp.ne.s32.totalorder %s17_s13, %s204_s14  ;;  %p210_p2 = scmp.lt.s32.totalorder %s204_s14, %s204_s14 }
   0x7   :  { %p211_p3 = por %p210_p2, %p209_p1 }
   0x9   :  { %p212_p4 = pnand %p211_p3, %p205_p0 }
   0xb   :  { %215 = shalt.err (!%p212_p4)
}
   0xc   :  { %s263_s15 = smov 256   ;;  %s264_s16 = smov 16  }
   0xd   :  { %22 = dma.hbm_to_vmem [thread:$0]  %s303_s0, 512, %s17_s13, [#allocation4], %s263_s15, %s263_s15, %s264_s16  }
   0xe   :  { %s265_s19 = smov [#allocation6]  }
   0xf   :  { %s29_s20 = sshll.u32 %s265_s19, 4  ;;  %s30_s20 = int_to_ptr.vmem [resolvable:$true] %s29_s20 }
  0x10   :  { %s224_s21 = scalar_lea.vmem %s30_s20, 128  ;;  %p229_p6 = scmp.lt.s32.totalorder %s30_s20, %s30_s20 }
  0x11   :  { %p225_p5 = scmp.ne.s32.totalorder %s30_s20, %s224_s21  ;;  %p230_p7 = scmp.lt.s32.totalorder %s224_s21, %s224_s21 }
  0x13   :  { %p231_p8 = por %p230_p7, %p229_p6 }
  0x15   :  { %p232_p9 = pnand %p231_p8, %p225_p5 }
  0x17   :  { %235 = shalt.err (!%p232_p9)
}
  0x18   :  { %32 = dma.hbm_to_vmem [thread:$0]  %s304_s1, 128, %s30_s20, [#allocation7]  }
  0x19   :  { %256 = dma.done.wait [#allocation4], 512  }
  0x1a   :  { %257 = vsyncadd [#allocation4], 4294966784 }
  0x1b   :  { %258 = dma.done.wait [#allocation7], 128  }
  0x1c   :  { %259 = vsyncadd [#allocation7], 4294967168  ;;  %v48_v0 = vld [vmem:[#allocation3] sm:$0xff]  ;;  %v49_v1 = vld [vmem:[#allocation3 + $0x8] sm:$0xff]  ;;  %vm45_vm0 = vcmask 58368   ;;  %v266_v6 = vmov 0.0   ;;  %v60_v8 = vlaneseq }
  0x1d   :  { %v50_v2 = vld [vmem:[#allocation3 + $0x10] sm:$0xff]  ;;  %v52_v3 = vadd.f32 %v49_v1, %v48_v0  ;;  %v51_v4 = vld [vmem:[#allocation3 + $0x18] sm:$0xff]  ;;  %46 = vst.msk [vmem:[#allocation2] sm:$0x3] %vm45_vm0, %v266_v6  ;;  %184 = vmatprep.subr.mxu0 %v266_v6  ;;  %v80_v7 = vld [vmem:[#allocation6] sm:$0xff]  ;;  %vm267_vm1 = vmmov 0  }
  0x1e   :  { %v55_v5 = vadd.f32 %v51_v4, %v50_v2  ;;  %185 = vmatpush3.msra.mxu0 %v80_v7  ;;  %186 = vmatprep.mubr.msk.f32.mxu0 %vm267_vm1, %v266_v6  ;;  %v61_v9 = vand.u32 127, %v60_v8  ;;  %v63_v10 = vshrl.u32 %v60_v8, 7  ;;  %vm70_vm2 = vcmask 1041409   ;;  %v180_v20 = vld [vmem:[%s305_s2] ss:$0 sm:$0xff]  ;;  %s268_s24 = smov [#allocation8]  }
  0x1f   :  { %53 = vadd.xlane.f32.xlu0 %v52_v3  ;;  %vm88_vm3 = vcmask 64512   ;;  %s170_s25 = sshll.u32 %s268_s24, 4  ;;  %vm162_vm4 = vcmask 74752   ;;  %s171_s25 = int_to_ptr.vmem [resolvable:$true] %s170_s25 }
  0x20   :  { %v64_v12 = vsub.s32 %v61_v9, %v63_v10  ;;  %s236_s26 = scalar_lea.vmem %s171_s25, 32  ;;  %p241_p11 = scmp.lt.s32.totalorder %s171_s25, %s171_s25 }
  0x21   :  { %p237_p10 = scmp.ne.s32.totalorder %s171_s25, %s236_s26  ;;  %p242_p12 = scmp.lt.s32.totalorder %s236_s26, %s236_s26 }
  0x23   :  { %56 = vadd.xlane.f32.xlu0 %v55_v5  ;;  %p243_p13 = por %p242_p12, %p241_p11 }
  0x24   :  { %v47_v16 = vld [vmem:[#allocation2] sm:$0x3] }
  0x25   :  { %p244_p0 = pnand %p243_p13, %p237_p10 }
  0xa8   :  { %v54_v11 = vpop.xlane.xlu0 %53 }
  0xa9   :  { %v65_v14 = vrot.slane %v54_v11, %v64_v12 }
  0xac   :  { %v57_v13 = vpop.xlane.xlu0 %56 }
  0xad   :  { %v69_v15 = vrot.slane %v57_v13, %v64_v12 }
  0xaf   :  { %v71_v17 = vsel %vm70_vm2, %v69_v15, %v65_v14 }
  0xb0   :  { %v73_v18 = vadd.f32 %v71_v17, %v47_v16 }
  0xb2   :  { %75 = vst.msk [vmem:[#allocation2] sm:$0x3] %vm45_vm0, %v73_v18 }
  0xb9   :  { %v79_v19 = vld [vmem:[#allocation2] sm:$0x3] }
  0xba   :  { %187 = vmatmul.mubr.msk.f32.vlgmr.msra.gmra.mxu0 %vm88_vm3, %v79_v19 }
 0x17a   :  { %v158_v21 = vpop.f32.mrf.mxu0 }
 0x17b   :  { %v159_v22 = vadd.f32 %v180_v20, %v158_v21 }
 0x17c   :  { %v188_v23 = vpop.f32.mrf.mxu0 }
 0x17d   :  { %163 = vst.msk [vmem:[#allocation8] sm:$0x3] %vm162_vm4, %v159_v22 }
 0x17e   :  { %247 = shalt.err (!%p244_p0)
}
 0x17f   :  { %173 = dma.vmem_to_hbm [thread:$0]  %s171_s25, 32, %s306_s3, [#allocation5]  }
 0x180   :  { %260 = dma.done.wait [#allocation5], 32  }
 0x181   :  { %261 = vsyncadd [#allocation5], 4294967264 }
 0x182   :  { %177 = vsyncpa [#allocation4], 1 }
 0x183   :  { %178 = vsyncpa [#allocation7], 1 }
 0x184   :  { %179 = vsyncpa [#allocation5], 1 }

</bundles_post_ra>
